<compile_context>
chip_gen: v7x
topology: tpu7x:2x2x1
jax: 0.10.0
libtpu: 0.0.40
codegen_flags: <defaults>
</compile_context>

<pallas_src>
import math
from functools import partial

import jax
import jax.numpy as jnp
from jax import lax
from jax.experimental import pallas as pl
from jax.experimental.pallas import tpu as pltpu


def _round_up(x, m):
    return ((x + m - 1) // m) * m


def _physical_vmem_bytes():
    try:
        return int(pltpu.get_tpu_info().vmem_capacity_bytes)
    except Exception:
        return 64 << 20  # conservative fallback (v7x per-TC VMEM)


# --------------------------------------------------------------------------
# Kernel
# --------------------------------------------------------------------------
def _lm_head_kernel(x_ref, w1_ref, b1_ref, g_ref, beta_ref, w2_ref, b2_ref,
                    o_ref, h_ref, *, eps):
    j = pl.program_id(1)

    # ---- transform (dense + gelu + LayerNorm), once per row tile -----------
    @pl.when(j == 0)
    def _():
        # x: (tm, H) ; W1 native (H_out, H_in): y = x @ W1.T
        h = lax.dot_general(
            x_ref[...], w1_ref[...],
            dimension_numbers=(((1,), (1,)), ((), ())),
            preferred_element_type=jnp.float32)
        h = h + b1_ref[...]                                   # f32 bias
        # exact gelu: x * 0.5 * (1 + erf(x / sqrt(2)))
        h = h * 0.5 * (1.0 + lax.erf(h * (1.0 / math.sqrt(2.0))))
        # LayerNorm over hidden axis (biased variance), f32 statistics.
        mean = jnp.mean(h, axis=-1, keepdims=True)
        var = jnp.mean((h - mean) * (h - mean), axis=-1, keepdims=True)
        h = (h - mean) * lax.rsqrt(var + eps)
        # Store the cached transform result in the MXU compute dtype (bf16):
        # no per-vocab-tile f32 reload / cast, half the scratch VMEM.
        h_ref[...] = (h * g_ref[...] + beta_ref[...]).astype(h_ref.dtype)

    # ---- decoder: h @ W2_tile.T + b2_tile, per vocab tile -------------------
    out = lax.dot_general(
        h_ref[...], w2_ref[...],                              # W2 native (tn, H)
        dimension_numbers=(((1,), (1,)), ((), ())),
        preferred_element_type=jnp.float32)
    out = out + b2_ref[...]
    o_ref[...] = out.astype(o_ref.dtype)


# --------------------------------------------------------------------------
# Parameter preparation (do ONCE at model-load time, not per forward call)
# --------------------------------------------------------------------------
def prepare_lm_head_params(params, *, tn=1024, compute_dtype=jnp.bfloat16):
    """Casts weights to the MXU compute dtype and pads the vocab dim once."""
    H = params["dense_w"].shape[1]
    V = params["decoder_w"].shape[0]
    tn = min(tn, _round_up(V, 128))
    V_pad = _round_up(V, tn)

    w1 = params["dense_w"].astype(compute_dtype)              # (H, H) native
    b1 = params["dense_b"].astype(jnp.float32).reshape(1, H)
    gamma = params["ln_g"].astype(jnp.float32).reshape(1, H)
    beta = params["ln_b"].astype(jnp.float32).reshape(1, H)
    w2 = params["decoder_w"].astype(compute_dtype)            # (V, H) native
    b2 = params["decoder_b"].astype(jnp.float32).reshape(1, V)
    if V_pad != V:
        w2 = jnp.pad(w2, ((0, V_pad - V), (0, 0)))
        b2 = jnp.pad(b2, ((0, 0), (0, V_pad - V)))

    return {"w1": w1, "b1": b1, "gamma": gamma, "beta": beta,
            "w2": w2, "b2": b2, "H": H, "V": V, "V_pad": V_pad,
            "tn": tn, "compute_dtype": compute_dtype}


# --------------------------------------------------------------------------
# Forward
# --------------------------------------------------------------------------
def bert_lm_prediction_head(hidden_states, prepared, *, eps=1e-12, tm=512,
                            out_dtype=None):
    """hidden_states: (B, S, H) -> logits (B, S, V)."""
    B, S, H = hidden_states.shape
    assert H == prepared["H"]
    V, V_pad, tn = prepared["V"], prepared["V_pad"], prepared["tn"]
    compute_dtype = prepared["compute_dtype"]
    out_dtype = hidden_states.dtype if out_dtype is None else out_dtype

    M = B * S
    M8 = _round_up(M, 8)
    tm = min(tm, M8)
    # Guarantee >= 2 row tiles whenever the problem permits it so the
    # "parallel" row axis actually feeds both TensorCores on v7x (megacore).
    if M8 // tm < 2 and M8 >= 16:
        tm = _round_up((M8 + 1) // 2, 8)
    M_pad = _round_up(M, tm)

    # Only the activations are cast per call (cheap); weights were prepped once.
    x2d = hidden_states.reshape(M, H).astype(compute_dtype)
    if M_pad != M:
        # Zero-padded rows produce var=0 -> rsqrt(eps) * 0 = finite values; they
        # are sliced off below, so this is benign (do not change to non-zero pad).
        x2d = jnp.pad(x2d, ((0, M_pad - M), (0, 0)))

    grid = (M_pad // tm, V_pad // tn)

    # Explicit VMEM budget: double-buffered streamed tiles + resident blocks,
    # capped generation-aware (<= 75% of physical VMEM per core; v7x = 64 MiB).
    bpe = jnp.dtype(compute_dtype).itemsize
    obpe = jnp.dtype(out_dtype).itemsize
    vmem_bytes = (
        2 * (tm * H * bpe            # x tiles
             + tn * H * bpe          # W2 tiles
             + tm * tn * obpe        # out tiles
             + tn * 4)               # b2 tiles
        + 2 * H * H * bpe            # W1
        + 2 * 3 * H * 4              # b1 / gamma / beta
        + tm * H * bpe)              # h scratch (compute dtype)
    vmem_limit = min(int(vmem_bytes) + (16 << 20),
                     int(_physical_vmem_bytes() * 0.75))
    vmem_limit = max(vmem_limit, int(vmem_bytes) + (1 << 20))

    out2d = pl.pallas_call(
        partial(_lm_head_kernel, eps=eps),
        out_shape=jax.ShapeDtypeStruct((M_pad, V_pad), out_dtype),
        grid_spec=pltpu.PrefetchScalarGridSpec(
            num_scalar_prefetch=0,
            grid=grid,
            in_specs=[
                pl.BlockSpec((tm, H), lambda i, j: (i, 0)),   # x row tile
                pl.BlockSpec((H, H), lambda i, j: (0, 0)),    # W1 (native)
                pl.BlockSpec((1, H), lambda i, j: (0, 0)),    # b1
                pl.BlockSpec((1, H), lambda i, j: (0, 0)),    # LN gamma
                pl.BlockSpec((1, H), lambda i, j: (0, 0)),    # LN beta
                pl.BlockSpec((tn, H), lambda i, j: (j, 0)),   # W2 vocab tile (native layout)
                pl.BlockSpec((1, tn), lambda i, j: (0, j)),   # b2 vocab tile
            ],
            out_specs=pl.BlockSpec((tm, tn), lambda i, j: (i, j)),
            # Cached h = LN(gelu(dense(x))) in the MXU compute dtype.
            scratch_shapes=[pltpu.VMEM((tm, H), compute_dtype)],
        ),
        compiler_params=pltpu.CompilerParams(
            dimension_semantics=("parallel", "arbitrary"),
            vmem_limit_bytes=vmem_limit),
    )(x2d, prepared["w1"], prepared["b1"], prepared["gamma"],
      prepared["beta"], prepared["w2"], prepared["b2"])

    # Slice only if padding was applied (avoids a full logits copy otherwise).
    if M_pad != M or V_pad != V:
        out2d = out2d[:M, :V]
    return out2d.reshape(B, S, V)


# --------------------------------------------------------------------------
# Pure-JAX reference
# --------------------------------------------------------------------------
def _reference(hidden_states, params, eps=1e-12):
    """Pure-JAX f32 reference mirroring the PyTorch module."""
    x = hidden_states.astype(jnp.float32)
    h = x @ params["dense_w"].T + params["dense_b"]
    h = h * 0.5 * (1.0 + lax.erf(h / jnp.sqrt(2.0)))
    mean = jnp.mean(h, axis=-1, keepdims=True)
    var = jnp.mean((h - mean) ** 2, axis=-1, keepdims=True)
    h = (h - mean) / jnp.sqrt(var + eps) * params["ln_g"] + params["ln_b"]
    return h @ params["decoder_w"].T + params["decoder_b"]


if __name__ == "__main__":
    # Small config consistent with the module: batch=2, seq=8, hidden=32, vocab=128.
    B, S, H, V = 2, 8, 32, 128
    key = jax.random.PRNGKey(0)
    k_x, k_w1, k_b1, k_w2 = jax.random.split(key, 4)

    hidden_states = jax.random.normal(k_x, (B, S, H), dtype=jnp.float32)

    params = {
        # nn.Linear(hidden, hidden): weight (H, H), bias (H,)
        "dense_w": jax.random.normal(k_w1, (H, H), dtype=jnp.float32) * 0.05,
        "dense_b": jax.random.normal(k_b1, (H,), dtype=jnp.float32) * 0.05,
        # nn.LayerNorm(hidden): gamma ones, beta zeros (PyTorch default init)
        "ln_g": jnp.ones((H,), dtype=jnp.float32),
        "ln_b": jnp.zeros((H,), dtype=jnp.float32),
        # nn.Linear(hidden, vocab, bias=False): weight (V, H)
        "decoder_w": jax.random.normal(k_w2, (V, H), dtype=jnp.float32) * 0.05,
        # self.bias = nn.Parameter(torch.zeros(vocab))
        "decoder_b": jnp.zeros((V,), dtype=jnp.float32),
    }

    # Weight prep (cast + pad) happens ONCE, outside the per-call hot path.
    prepared = prepare_lm_head_params(params)

    out = bert_lm_prediction_head(hidden_states, prepared)
    out = jax.block_until_ready(out)

    ref = _reference(hidden_states, params)
    assert out.shape == (B, S, V)
    # bf16 MXU operands (f32 accumulation) => slightly looser tolerance than pure f32.
    assert jnp.allclose(out.astype(jnp.float32), ref, atol=5e-2, rtol=5e-2), \
        "mismatch vs reference"

    print("KERNEL_OK")
</pallas_src>

<mosaic_0001>
module attributes {stable_mosaic.version = 11 : i64} {
  func.func @_lm_head_kernel(%arg0: i32, %arg1: i32, %arg2: memref<8x32xbf16, #tpu.memory_space<vmem>>, %arg3: memref<32x32xbf16, #tpu.memory_space<vmem>>, %arg4: memref<1x32xf32, #tpu.memory_space<vmem>>, %arg5: memref<1x32xf32, #tpu.memory_space<vmem>>, %arg6: memref<1x32xf32, #tpu.memory_space<vmem>>, %arg7: memref<128x32xbf16, #tpu.memory_space<vmem>>, %arg8: memref<1x128xf32, #tpu.memory_space<vmem>>, %arg9: memref<8x128xf32, #tpu.memory_space<vmem>>, %arg10: memref<8x32xbf16, #tpu.memory_space<vmem>>) attributes {dimension_semantics = [#tpu.dimension_semantics<parallel>, #tpu.dimension_semantics<arbitrary>], iteration_bounds = array<i64: 2, 1>, scalar_prefetch = 0 : i64, scratch_operands = 1 : i64, tpu.core_type = #tpu.core_type<tc>, window_params = [{transform_indices = @transform_0, window_bounds = array<i64: 8, 32>}, {pipeline_mode = #tpu.pipeline_mode<synchronous>, transform_indices = @transform_1, window_bounds = array<i64: 32, 32>}, {pipeline_mode = #tpu.pipeline_mode<synchronous>, transform_indices = @transform_2, window_bounds = array<i64: 1, 32>}, {pipeline_mode = #tpu.pipeline_mode<synchronous>, transform_indices = @transform_3, window_bounds = array<i64: 1, 32>}, {pipeline_mode = #tpu.pipeline_mode<synchronous>, transform_indices = @transform_4, window_bounds = array<i64: 1, 32>}, {transform_indices = @transform_5, window_bounds = array<i64: 128, 32>}, {transform_indices = @transform_6, window_bounds = array<i64: 1, 128>}, {transform_indices = @transform_7, window_bounds = array<i64: 8, 128>}]} {
    %c0_i32 = arith.constant 0 : i32
    %0 = arith.cmpi eq, %arg1, %c0_i32 : i32
    %1 = arith.extui %0 : i1 to i32
    %c0_i32_0 = arith.constant 0 : i32
    %2 = arith.cmpi ne, %1, %c0_i32_0 : i32
    scf.if %2 {
      %c0_8 = arith.constant 0 : index
      %c0_9 = arith.constant 0 : index
      %10 = vector.load %arg2[%c0_8, %c0_9] : memref<8x32xbf16, #tpu.memory_space<vmem>>, vector<8x32xbf16>
      %c0_10 = arith.constant 0 : index
      %c0_11 = arith.constant 0 : index
      %11 = vector.load %arg3[%c0_10, %c0_11] : memref<32x32xbf16, #tpu.memory_space<vmem>>, vector<32x32xbf16>
      %cst_12 = arith.constant dense<0.000000e+00> : vector<8x32xf32>
      %12 = tpu.matmul %10, %11, %cst_12 {dimension_numbers = #tpu.dot_dimension_numbers<[1], [1], [0], [0], [0, 0, 1, 0], [], []>} : vector<8x32xbf16>, vector<32x32xbf16>, vector<8x32xf32> -> vector<8x32xf32>
      %c0_13 = arith.constant 0 : index
      %c0_14 = arith.constant 0 : index
      %13 = vector.load %arg4[%c0_13, %c0_14] : memref<1x32xf32, #tpu.memory_space<vmem>>, vector<1x32xf32>
      %14 = vector.broadcast %13 : vector<1x32xf32> to vector<8x32xf32>
      %15 = arith.addf %12, %14 : vector<8x32xf32>
      %cst_15 = arith.constant 5.000000e-01 : f32
      %16 = vector.broadcast %cst_15 : f32 to vector<8x32xf32>
      %17 = arith.mulf %15, %16 : vector<8x32xf32>
      %cst_16 = arith.constant 0.707106769 : f32
      %18 = vector.broadcast %cst_16 : f32 to vector<8x32xf32>
      %19 = arith.mulf %15, %18 : vector<8x32xf32>
      %20 = math.erf %19 : vector<8x32xf32>
      %cst_17 = arith.constant 1.000000e+00 : f32
      %21 = vector.broadcast %cst_17 : f32 to vector<8x32xf32>
      %22 = arith.addf %21, %20 : vector<8x32xf32>
      %23 = arith.mulf %17, %22 : vector<8x32xf32>
      %cst_18 = arith.constant dense<0.000000e+00> : vector<8xf32>
      %24 = vector.multi_reduction <add>, %23, %cst_18 [1] : vector<8x32xf32> to vector<8xf32>
      %25 = vector.shape_cast %24 : vector<8xf32> to vector<8x1xf32>
      %cst_19 = arith.constant 3.200000e+01 : f32
      %26 = vector.broadcast %cst_19 : f32 to vector<8x1xf32>
      %27 = arith.divf %25, %26 : vector<8x1xf32>
      %28 = vector.broadcast %27 : vector<8x1xf32> to vector<8x32xf32>
      %29 = arith.subf %23, %28 : vector<8x32xf32>
      %30 = vector.broadcast %27 : vector<8x1xf32> to vector<8x32xf32>
      %31 = arith.subf %23, %30 : vector<8x32xf32>
      %32 = arith.mulf %29, %31 : vector<8x32xf32>
      %cst_20 = arith.constant dense<0.000000e+00> : vector<8xf32>
      %33 = vector.multi_reduction <add>, %32, %cst_20 [1] : vector<8x32xf32> to vector<8xf32>
      %34 = vector.shape_cast %33 : vector<8xf32> to vector<8x1xf32>
      %cst_21 = arith.constant 3.200000e+01 : f32
      %35 = vector.broadcast %cst_21 : f32 to vector<8x1xf32>
      %36 = arith.divf %34, %35 : vector<8x1xf32>
      %37 = vector.broadcast %27 : vector<8x1xf32> to vector<8x32xf32>
      %38 = arith.subf %23, %37 : vector<8x32xf32>
      %cst_22 = arith.constant 9.99999996E-13 : f32
      %39 = vector.broadcast %cst_22 : f32 to vector<8x1xf32>
      %40 = arith.addf %36, %39 : vector<8x1xf32>
      %41 = math.rsqrt %40 : vector<8x1xf32>
      %42 = vector.broadcast %41 : vector<8x1xf32> to vector<8x32xf32>
      %43 = arith.mulf %38, %42 : vector<8x32xf32>
      %c0_23 = arith.constant 0 : index
      %c0_24 = arith.constant 0 : index
      %44 = vector.load %arg5[%c0_23, %c0_24] : memref<1x32xf32, #tpu.memory_space<vmem>>, vector<1x32xf32>
      %45 = vector.broadcast %44 : vector<1x32xf32> to vector<8x32xf32>
      %46 = arith.mulf %43, %45 : vector<8x32xf32>
      %c0_25 = arith.constant 0 : index
      %c0_26 = arith.constant 0 : index
      %47 = vector.load %arg6[%c0_25, %c0_26] : memref<1x32xf32, #tpu.memory_space<vmem>>, vector<1x32xf32>
      %48 = vector.broadcast %47 : vector<1x32xf32> to vector<8x32xf32>
      %49 = arith.addf %46, %48 : vector<8x32xf32>
      %50 = arith.truncf %49 : vector<8x32xf32> to vector<8x32xbf16>
      %c0_27 = arith.constant 0 : index
      %c0_28 = arith.constant 0 : index
      %51 = vector.load %arg10[%c0_27, %c0_28] : memref<8x32xbf16, #tpu.memory_space<vmem>>, vector<8x32xbf16>
      tpu.vector_store %arg10[%c0_27, %c0_28], %50 {strides = array<i32>} : memref<8x32xbf16, #tpu.memory_space<vmem>>, vector<8x32xbf16>,
    } else {
    }
    %c0 = arith.constant 0 : index
    %c0_1 = arith.constant 0 : index
    %3 = vector.load %arg10[%c0, %c0_1] : memref<8x32xbf16, #tpu.memory_space<vmem>>, vector<8x32xbf16>
    %c0_2 = arith.constant 0 : index
    %c0_3 = arith.constant 0 : index
    %4 = vector.load %arg7[%c0_2, %c0_3] : memref<128x32xbf16, #tpu.memory_space<vmem>>, vector<128x32xbf16>
    %cst = arith.constant dense<0.000000e+00> : vector<8x128xf32>
    %5 = tpu.matmul %3, %4, %cst {dimension_numbers = #tpu.dot_dimension_numbers<[1], [1], [0], [0], [0, 0, 1, 0], [], []>} : vector<8x32xbf16>, vector<128x32xbf16>, vector<8x128xf32> -> vector<8x128xf32>
    %c0_4 = arith.constant 0 : index
    %c0_5 = arith.constant 0 : index
    %6 = vector.load %arg8[%c0_4, %c0_5] : memref<1x128xf32, #tpu.memory_space<vmem>>, vector<1x128xf32>
    %7 = vector.broadcast %6 : vector<1x128xf32> to vector<8x128xf32>
    %8 = arith.addf %5, %7 : vector<8x128xf32>
    %c0_6 = arith.constant 0 : index
    %c0_7 = arith.constant 0 : index
    %9 = vector.load %arg9[%c0_6, %c0_7] : memref<8x128xf32, #tpu.memory_space<vmem>>, vector<8x128xf32>
    tpu.vector_store %arg9[%c0_6, %c0_7], %8 {strides = array<i32>} : memref<8x128xf32, #tpu.memory_space<vmem>>, vector<8x128xf32>,
    return
  }
  func.func @transform_0(%arg0: i32, %arg1: i32) -> (i32, i32) {
    %c0_i32 = arith.constant 0 : i32
    %c0_i32_0 = arith.constant 0 : i32
    return %arg0, %c0_i32 : i32, i32
  }
  func.func @transform_1(%arg0: i32, %arg1: i32) -> (i32, i32) {
    %c0_i32 = arith.constant 0 : i32
    %c0_i32_0 = arith.constant 0 : i32
    %c0_i32_1 = arith.constant 0 : i32
    return %c0_i32, %c0_i32_0 : i32, i32
  }
  func.func @transform_2(%arg0: i32, %arg1: i32) -> (i32, i32) {
    %c0_i32 = arith.constant 0 : i32
    %c0_i32_0 = arith.constant 0 : i32
    %c0_i32_1 = arith.constant 0 : i32
    return %c0_i32, %c0_i32_0 : i32, i32
  }
  func.func @transform_3(%arg0: i32, %arg1: i32) -> (i32, i32) {
    %c0_i32 = arith.constant 0 : i32
    %c0_i32_0 = arith.constant 0 : i32
    %c0_i32_1 = arith.constant 0 : i32
    return %c0_i32, %c0_i32_0 : i32, i32
  }
  func.func @transform_4(%arg0: i32, %arg1: i32) -> (i32, i32) {
    %c0_i32 = arith.constant 0 : i32
    %c0_i32_0 = arith.constant 0 : i32
    %c0_i32_1 = arith.constant 0 : i32
    return %c0_i32, %c0_i32_0 : i32, i32
  }
  func.func @transform_5(%arg0: i32, %arg1: i32) -> (i32, i32) {
    %c0_i32 = arith.constant 0 : i32
    %c0_i32_0 = arith.constant 0 : i32
    return %arg1, %c0_i32 : i32, i32
  }
  func.func @transform_6(%arg0: i32, %arg1: i32) -> (i32, i32) {
    %c0_i32 = arith.constant 0 : i32
    %c0_i32_0 = arith.constant 0 : i32
    return %c0_i32, %arg1 : i32, i32
  }
  func.func @transform_7(%arg0: i32, %arg1: i32) -> (i32, i32) {
    %c0_i32 = arith.constant 0 : i32
    return %arg0, %arg1 : i32, i32
  }
}

</mosaic_0001>

<bundles_post_ra>
// kernel: tpu_custom_call.1
= control target key start
LH: loop header
LB: loop body
LE: loop exit
PB: predicated region body
PF: predicated region fallthrough
CT: control target
= control target key end

     0   :  { %12 = vsyncpa [#allocation4], 0  ;;  %s1125_s0 = inlined_call_operand.vmem [shape: bf16[16,32], index: 0, kind: input, shape index: {}]   ;;  %s1126_s1 = inlined_call_operand.vmem [shape: bf16[32,32], index: 1, kind: input, shape index: {}]   ;;  %s1127_s2 = inlined_call_operand.vmem [shape: f32[1,32], index: 2, kind: input, shape index: {}]   ;;  %s1128_s3 = inlined_call_operand.vmem [shape: f32[1,32], index: 3, kind: input, shape index: {}]   ;;  %s1129_s4 = inlined_call_operand.vmem [shape: f32[1,32], index: 4, kind: input, shape index: {}]   ;;  %s1130_s5 = inlined_call_operand.vmem [shape: bf16[128,32], index: 5, kind: input, shape index: {}]   ;;  %s1131_s6 = inlined_call_operand.vmem [shape: f32[1,128], index: 6, kind: input, shape index: {}]   ;;  %s1132_s7 = inlined_call_operand.hbm [shape: f32[16,128], index: 7, kind: output, shape index: {}]  }
   0x1   :  { %14 = vsyncpa [#allocation4 + $0x1], 0  ;;  %s945_s24 = smov 0   ;;  %s947_s25 = smov 0  }
   0x2   :  { %s949_s26 = smov 0   ;;  %s951_s27 = smov 0  }
   0x3   :  { %s953_s28 = smov 0   ;;  %s955_s29 = smov 0  }
   0x4 LB: > { %s682_s30 = sadd.s32 4294967295, %s900_s29   ;;  %s683_s8 = sadd.s32 4294967294, %s900_s29   ;;  %s900_s29 = sphi %s955_s29, %s20_s29   ;;  %s896_s28 = sphi %s953_s28, %s1139_s28   ;;  %s892_s27 = sphi %s951_s27, %s1138_s27   ;;  %s888_s26 = sphi %s949_s26, %s1137_s26   ;;  %s884_s25 = sphi %s947_s25, %s1136_s25   ;;  %s880_s24 = sphi %s945_s24, %s1135_s24  }
   0x5   : > { %s32_s9 = sadd.s32 1, %s896_s28  ;;  %s203_s10 = sadd.s32 1, %s888_s26 }
   0x6   : > { %p34_p0 = scmp.ge.s32.totalorder %s32_s9, 2  ;;  %p213_p1 = scmp.ne.s32.totalorder %s888_s26, %s884_s25 }
   0x7   : > { %p214_p2 = scmp.eq.s32.totalorder %s682_s30, 1  ;;  %p219_p3 = scmp.ne.s32.totalorder %s884_s25, %s880_s24 }
   0x8   : > { %s1141_s9 = smov (%p34_p0, %s32_s9), 0  ;;  %p220_p5 = scmp.eq.s32.totalorder %s683_s8, 1 }
   0x9   : > { %p985_p4 = por %p214_p2, %p213_p1  ;;  %s198_s12 = ssub.s32 %s896_s28, %s1141_s9 }
   0xa   : > { %p688_p6 = scmp.ge.s32.totalorder %s900_s29, 1  ;;  %p201_p7 = scmp.eq.s32.totalorder %s198_s12, 0 }
   0xb   : > { %p992_p8 = por %p220_p5, %p219_p3  ;;  %p272_p9 = scmp.lt.s32.totalorder %s900_s29, 3 }
   0xc   : > { %s998_s14 = scalar_select %p201_p7, %s888_s26, %s203_s10  }
   0xd   : > { %p273_p10 = pnand %p688_p6, %p272_p9 }
   0xe   : > { %v808_v0 = vld [vmem:[%s1126_s1] sm:$0xff] (!%p273_p10)   ;;  %v902_v1 = vmov (!%p273_p10), 0.0   ;;  %vm351_vm0 = vcmask (!%p273_p10), 261120   ;;  %p311_p11 = scmp.lt.s32.totalorder (!%p273_p10), %s892_s27, 1  ;;  %vm903_vm1 = vmmov (!%p273_p10), 0   ;;  %v809_v3 = vld [vmem:[%s1126_s1 + $0x8] sm:$0xff] (!%p273_p10)  }
   0xf   : > { %276 = sbr.rel (%p273_p10) target bundleno = 813 (0x32d), region = 48  ;;  %723 = vmatprep.subr.bf16.mxu0 (!%p273_p10), %v902_v1  ;;  %731 = vmatprep.subr.bf16.mxu1 (!%p273_p10), %v902_v1  ;;  %v356_v2 = vsel (!%p273_p10), %vm351_vm0, %v808_v0, 0  ;;  %v359_v4 = vsel (!%p273_p10), %vm351_vm0, %v809_v3, 0  ;;  %v691_v6 = vld [vmem:[%s1127_s2] ss:$0 sm:$0xff] (!%p273_p10)  ;;  %v811_v20 = vld [vmem:[%s1130_s5 + $0x8] sm:$0xff] (!%p273_p10)  }
  0x10   : > { %724 = vmatpush3.bf16.xpose.msra.mxu0 (!%p273_p10), %v356_v2  ;;  %727 = vmatprep.mubr.msk.bf16.mxu0 (!%p273_p10), %vm903_vm1, %v902_v1  ;;  %v810_v18 = vld [vmem:[%s1130_s5] sm:$0xff] (!%p273_p10)   ;;  %v511_v21 = vsel (!%p273_p10), %vm351_vm0, %v811_v20, 0  ;;  %v812_v22 = vld [vmem:[%s1130_s5 + $0x10] sm:$0xff] (!%p273_p10)   ;;  %v813_v24 = vld [vmem:[%s1130_s5 + $0x18] sm:$0xff] (!%p273_p10)   ;;  %vm437_vm2 = vcmask (!%p273_p10), 257024   ;;  %s708_s30 = sshll.u32 (!%p273_p10), %s892_s27, 7 }
  0x11   : > { %725 = vmatprep.subr.bf16.mxu0 (!%p273_p10), %v902_v1  ;;  %747 = vmatprep.mubr.msk.bf16.mxu1 (!%p273_p10), %vm903_vm1, %v902_v1  ;;  %v508_v19 = vsel (!%p273_p10), %vm351_vm0, %v810_v18, 0  ;;  %v514_v23 = vsel (!%p273_p10), %vm351_vm0, %v812_v22, 0  ;;  %v517_v25 = vsel (!%p273_p10), %vm351_vm0, %v813_v24, 0  ;;  %v814_v31 = vld [vmem:[%s1130_s5 + $0x20] sm:$0xff] (!%p273_p10)   ;;  %v815_v33 = vld [vmem:[%s1130_s5 + $0x28] sm:$0xff] (!%p273_p10)   ;;  %v816_v35 = vld [vmem:[%s1130_s5 + $0x30] sm:$0xff] (!%p273_p10)   ;;  %s1078_s16 = scalar_lea.hbm (!%p273_p10), %s1132_s7, %s708_s30 }
  0x12   : > { %732 = vmatpush3.bf16.xpose.msra.mxu1 (!%p273_p10), %v508_v19  ;;  %v520_v32 = vsel (!%p273_p10), %vm351_vm0, %v814_v31, 0  ;;  %v523_v34 = vsel (!%p273_p10), %vm351_vm0, %v815_v33, 0  ;;  %v526_v36 = vsel (!%p273_p10), %vm351_vm0, %v816_v35, 0  ;;  %v817_v37 = vld [vmem:[%s1130_s5 + $0x38] sm:$0xff] (!%p273_p10)   ;;  %v695_v43 = vld [vmem:[%s1128_s3] ss:$0 sm:$0xff] (!%p273_p10) }
  0x13   : > { %733 = vmatprep.subr.bf16.mxu1 (!%p273_p10), %v902_v1  ;;  %v529_v38 = vsel (!%p273_p10), %vm351_vm0, %v817_v37, 0  ;;  %v696_v45 = vld [vmem:[%s1129_s4] ss:$0 sm:$0xff] (!%p273_p10)  ;;  %s904_s18 = smov (!%p273_p10), [#allocation3]  }
  0x14   : > { %v697_v50 = vld [vmem:[%s1131_s6] ss:$0 sm:$0xff] (!%p273_p10) }
  0x16   : > { %s312_s19 = scalar_select %p311_p11, %s892_s27, 1 }
  0x18   : > { %s690_s20 = sshll.u32 %s312_s19, 2  ;;  %726 = vmatpush3.bf16.xpose.msra.mxu0 %v359_v4  ;;  %s826_s19 = sshll.u32 %s904_s18, 4  ;;  %s827_s19 = int_to_ptr.vmem [resolvable:$false] %s826_s19 }
  0x19   : > { %s314_s23 = scalar_lea.vmem %s1125_s0, %s690_s20  ;;  %s308_s20 = sand.u32 1, %s884_s25  }
  0x1a   : > { %v329_v5 = vld [vmem:[%s314_s23] sm:$0xf]  ;;  %734 = vmatpush3.bf16.xpose.msra.mxu1 %v511_v21  ;;  %s689_s21 = sshll.u32 %s308_s20, 3  ;;  %s573_s17 = scalar_lea.sflag [#allocation4], %s308_s20 }
  0x1b   : > { %735 = vmatprep.subr.bf16.mxu1 %v902_v1  ;;  %s310_s8 = scalar_lea.vmem [#allocation3], %s689_s21  ;;  %s828_s21 = scalar_lea.vmem %s827_s19, 256 }
  0x1c   : > { %s587_s10 = sshll.u32 %s310_s8, 4  ;;  %s1080_s10 = int_to_ptr.vmem [resolvable:$true] %s587_s10 }
  0x1d   : > { %s822_s27 = scalar_lea.vmem %s1080_s10, 128  ;;  %p829_p1 = scmp.lt.s32.totalorder %s1080_s10, %s827_s19 }
  0x1e   : > { %p823_p12 = scmp.ne.s32.totalorder %s1080_s10, %s822_s27  ;;  %p830_p2 = scmp.lt.s32.totalorder %s828_s21, %s822_s27 }
  0x1f   : > { %728 = vmatmul.mubr.msk.bf16.vlgmr.msra.gmra.mrb[0].mxu0 %vm351_vm0, %v329_v5 }
  0x20   : > { %p824_p13 = pnand %p823_p12, %p985_p4  ;;  %p831_p3 = por %p830_p2, %p829_p1 }
  0x22   : > { %736 = vmatpush3.bf16.xpose.msra.mxu1 %v514_v23  ;;  %p825_p0 = pneg %p824_p13 }
  0x23   : > { %737 = vmatprep.subr.bf16.mxu1 %v902_v1 }
  0x24   : > { %p832_p5 = pnand %p831_p3, %p825_p0 }
  0x2a   : > { %738 = vmatpush3.bf16.xpose.msra.mxu1 %v517_v25 }
  0x2b   : > { %739 = vmatprep.subr.bf16.mxu1 %v902_v1 }
  0x32   : > { %740 = vmatpush3.bf16.xpose.msra.mxu1 %v520_v32 }
  0x33   : > { %741 = vmatprep.subr.bf16.mxu1 %v902_v1 }
  0x3a   : > { %742 = vmatpush3.bf16.xpose.msra.mxu1 %v523_v34 }
  0x3b   : > { %743 = vmatprep.subr.bf16.mxu1 %v902_v1 }
  0x42   : > { %744 = vmatpush3.bf16.xpose.msra.mxu1 %v526_v36 }
  0x43   : > { %745 = vmatprep.subr.bf16.mxu1 %v902_v1 }
  0x4a   : > { %746 = vmatpush3.bf16.xpose.msra.mxu1 %v529_v38 }
  0xf2   : > { %v395_v7 = vpop.f32.mrb[0].mxu0 }
  0xf3   : > { %v396_v8 = vadd.f32 %v691_v6, %v395_v7  ;;  %v729_v9 = vpop.f32.mrb[1].mxu0 }
  0xf4   : > { %v398_v10 = vpop.f32.mrb[2].mxu0 }
  0xf5   : > { %v402_v11 = vmul.f32 0.70710677, %v396_v8  ;;  %v730_v12 = vpop.f32.mrb[3].mxu0  ;;  %v401_v14 = vmul.f32 0.5, %v396_v8 }
  0xf7   : > { %818 = verf.f32 %v402_v11 }
 0x101   : > { %v819_v13 = vpop.eup %818 }
 0x102   : > { %v404_v15 = vadd.f32 1.0, %v819_v13 }
 0x104   : > { %v405_v16 = vmul.f32 %v404_v15, %v401_v14 }
 0x106   : > { %v406_v17 = vsel %vm351_vm0, %v405_v16, 0.0 }
 0x107   : > { %407 = vadd.xlane.f32.xlu0 %v406_v17 }
 0x194   : > { %v408_v26 = vpop.xlane.xlu0 %407 }
 0x195   : > { %v410_v27 = vmul.f32 0.03125, %v408_v26 }
 0x197   : > { %v411_v28 = vsub.f32 %v405_v16, %v410_v27 }
 0x199   : > { %v412_v29 = vmul.f32 %v411_v28, %v411_v28 }
 0x19b   : > { %v413_v30 = vsel %vm351_vm0, %v412_v29, 0.0 }
 0x19c   : > { %414 = vadd.xlane.f32.xlu0 %v413_v30 }
 0x229   : > { %v415_v39 = vpop.xlane.xlu0 %414 }
 0x22a   : > { %v416_v40 = vmul.f32 0.03125, %v415_v39 }
 0x22c   : > { %v417_v41 = vadd.f32 1e-12, %v416_v40 }
 0x22e   : > { %820 = vrsqrt.f32 %v417_v41 }
 0x238   : > { %v821_v42 = vpop.eup %820 }
 0x239   : > { %v419_v44 = vmul.f32 %v821_v42, %v411_v28 }
 0x23b   : > { %v427_v46 = vmul.f32 %v695_v43, %v419_v44 }
 0x23d   : > { %v435_v47 = vadd.f32 %v696_v45, %v427_v46 }
 0x23f   : > { %v436_v48 = vpack.c.bf16 %v435_v47, %v435_v47 }
 0x241   : > { %438 = vst.msk [vmem:[#allocation2] sm:$0xf] %vm437_vm2, %v436_v48 }
 0x248   : > { %v439_v49 = vld [vmem:[#allocation2] sm:$0xf] }
 0x249   : > { %748 = vmatmul.mubr.msk.bf16.vlgmr.msra.gmra.mrb[0].mxu1 %vm351_vm0, %v439_v49 }
 0x31c   : > { %v565_v51 = vpop.f32.mrb[0].mxu1 }
 0x31d   : > { %v566_v52 = vadd.f32 %v697_v50, %v565_v51  ;;  %v749_v53 = vpop.f32.mrb[1].mxu1 }
 0x31e   : > { %v568_v54 = vpop.f32.mrb[2].mxu1 }
 0x31f   : > { %571 = vst [vmem:[%s310_s8] sm:$0xff] %v566_v52  ;;  %v750_v55 = vpop.f32.mrb[3].mxu1 }
 0x320   : > { %835 = shalt.err (!%p832_p5)
}
 0x321   : > { %s836_s20 = scalar_lea.hbm %s1078_s16, 128  ;;  %s840_s30 = scalar_lea.hbm %s1132_s7, 256 }
 0x322   : > { %p837_p6 = scmp.ne.s32.totalorder %s1078_s16, %s836_s20  ;;  %p841_p10 = scmp.lt.u32.totalorder %s1078_s16, %s1132_s7 }
 0x323   : > { %p842_p11 = scmp.lt.u32.totalorder %s840_s30, %s836_s20  ;;  %p844_p13 = scmp.lt.u32.totalorder %s836_s20, %s1078_s16 }
 0x324   : > { %p838_p7 = pnand %p837_p6, %p985_p4 }
 0x325   : > { %p843_p12 = por %p842_p11, %p841_p10 }
 0x326   : > { %p839_p9 = pneg %p838_p7 }
 0x327   : > { %p845_p0 = por %p844_p13, %p843_p12 }
 0x329   : > { %p846_p1 = pnand %p845_p0, %p839_p9 }
 0x32b   : > { %849 = shalt.err (!%p846_p1)
}
 0x32c   : > { %751 = dma.vmem_to_hbm [thread:$0]  (%p985_p4), %s1080_s10, 128, %s1078_s16, %s573_s17  }
 0x32d PF: > { %p757_p2 = scmp.ge.s32.totalorder %s900_s29, 2  ;;  %s599_s15 = sand.u32 1, %s880_s24  }
 0x32e   : > { %s600_s27 = scalar_lea.sflag [#allocation4], %s599_s15 }
 0x32f   : > { %p754_p3 = pnand %p757_p2, %p992_p8 }
 0x331   : > { %875 = dma.done.wait (!%p754_p3), %s600_s27, 128  }
 0x332   : > { %877 = vsyncadd (!%p754_p3), %s600_s27, 4294967168  ;;  %s20_s29 = sadd.s32 1, %s900_s29   ;;  %s1135_s24 = smov %s884_s25 }
 0x333   : > { %p17_p5 = scmp.ge.s32.totalorder %s20_s29, 4   ;;  %s1136_s25 = smov %s888_s26 }
 0x334   : > { %s1137_s26 = smov %s998_s14  ;;  %s1138_s27 = smov %s896_s28 }
 0x335   : > { %s1139_s28 = smov %s1141_s9  ;;  %19 = sbr.rel (!%p17_p5) target bundleno = 4 (0x4), region = 93 }
 0x33c   :  { %605 = vsyncpa [#allocation4], 1 }
 0x33d   :  { %607 = vsyncpa [#allocation4 + $0x1], 1 }

</bundles_post_ra>
